<compile_context>
chip_gen: v7x
topology: tpu7x:2x2x1
jax: 0.10.0
libtpu: 0.0.40
codegen_flags: <defaults>
</compile_context>

<pallas_src>
import jax
import jax.numpy as jnp
from jax.experimental import pallas as pl
from jax.experimental.pallas import tpu as pltpu

HIDDEN = 128
_VMEM_LIMIT_BYTES = 32 * 1024 * 1024   # explicit scoped-VMEM limit (safe on v5e/v6e/v7x)
_VMEM_TILE_BUDGET = 20 * 1024 * 1024   # budget for streamed tiles + resident weights


def _round_up(n, m):
    return ((n + m - 1) // m) * m


def mine_critic_kernel(x_ref, y_ref, w1x_ref, w1y_ref, b1_ref, w2_ref, b2_ref,
                       w3_ref, b3_ref, o_ref):
    cdt = w1x_ref.dtype
    # Cast streamed activations in-kernel (VPU; hidden under the MXU work).
    x = x_ref[...].astype(cdt)
    y = y_ref[...].astype(cdt)

    # Layer 1 (concat-free): (tb, 2D) @ (2D, 128) == x @ W1[:D] + y @ W1[D:].
    h1 = jnp.dot(x, w1x_ref[...], preferred_element_type=jnp.float32)
    h1 = h1 + jnp.dot(y, w1y_ref[...], preferred_element_type=jnp.float32)
    h1 = jnp.maximum(h1 + b1_ref[...], 0.0)          # bias + ReLU in f32

    # Layer 2: (tb, 128) @ (128, 128).
    h2 = jnp.dot(h1.astype(cdt), w2_ref[...], preferred_element_type=jnp.float32)
    h2 = jnp.maximum(h2 + b2_ref[...], 0.0)

    # Head (128 -> 1): VPU multiply + lane reduction instead of a 1-column MXU matmul.
    out = jnp.sum(h2 * w3_ref[...], axis=-1, keepdims=True) + b3_ref[...]
    o_ref[...] = out.astype(o_ref.dtype)


def prepare_params(params, *, compute_dtype=jnp.bfloat16):
    """One-time weight prep (hoisted out of the forward path).

    params = (w1, b1, w2, b2, w3, b3) with w_k stored as (in_features, out_features).
    """
    w1, b1, w2, b2, w3, b3 = params
    two_d, hidden = w1.shape
    assert hidden == HIDDEN and two_d % 2 == 0
    d = two_d // 2
    return {
        "input_dim": d,
        "w1x": jnp.asarray(w1[:d], compute_dtype),               # (D, 128)
        "w1y": jnp.asarray(w1[d:], compute_dtype),               # (D, 128)
        "b1": jnp.asarray(b1, jnp.float32).reshape(1, HIDDEN),
        "w2": jnp.asarray(w2, compute_dtype),                    # (128, 128)
        "b2": jnp.asarray(b2, jnp.float32).reshape(1, HIDDEN),
        "w3": jnp.asarray(w3, jnp.float32).reshape(1, HIDDEN),   # head row for VPU
        "b3": jnp.asarray(b3, jnp.float32).reshape(1, 1),
    }


def _choose_batch_tile(batch, d, in_itemsize, w_itemsize, block_batch):
    """Pick the batch-tile size (multiple of 8), VMEM- and megacore-aware."""
    # Resident weights/biases (Pallas still allocates two pipeline buffers for them).
    weight_bytes = 2 * (2 * d * HIDDEN + HIDDEN * HIDDEN + 3 * HIDDEN) * w_itemsize
    # Per-row VMEM: x/y double buffers + f32 intermediates (h1, h2, head temp).
    per_row = 2 * 2 * d * in_itemsize + 3 * HIDDEN * 4
    budget = max(_VMEM_TILE_BUDGET - weight_bytes, 64 * 1024)
    tb = (budget // per_row) // 8 * 8
    tb = min(tb, block_batch)
    # v7x: keep >= ~4 grid steps when B is large enough that tiles stay >= 512 rows,
    # so a "parallel" 1-D grid gives both TensorCores work. No-op on v5e/v6e.
    tb = min(tb, max(512, _round_up(-(-batch // 4), 8)))
    tb = min(tb, _round_up(batch, 8))
    return max(tb, 8)


def mine_critic_forward(x, y, prepared, *, block_batch=4096):
    """x, y: (B, D) in their native dtype (no wrapper-side cast). Returns (B, 1) f32."""
    batch, d = x.shape
    assert y.shape == (batch, d) and prepared["input_dim"] == d

    tb = _choose_batch_tile(batch, d,
                            jnp.dtype(x.dtype).itemsize,
                            jnp.dtype(prepared["w1x"].dtype).itemsize,
                            block_batch)
    grid = (pl.cdiv(batch, tb),)

    batch_map = lambda i: (i, 0)
    fixed_map = lambda i: (0, 0)   # weights/biases stay resident across grid steps

    in_specs = [
        pl.BlockSpec((tb, d), batch_map),            # x tile (streamed, native dtype)
        pl.BlockSpec((tb, d), batch_map),            # y tile (streamed, native dtype)
        pl.BlockSpec((d, HIDDEN), fixed_map),        # w1x
        pl.BlockSpec((d, HIDDEN), fixed_map),        # w1y
        pl.BlockSpec((1, HIDDEN), fixed_map),        # b1
        pl.BlockSpec((HIDDEN, HIDDEN), fixed_map),   # w2
        pl.BlockSpec((1, HIDDEN), fixed_map),        # b2
        pl.BlockSpec((1, HIDDEN), fixed_map),        # w3 (head row)
        pl.BlockSpec((1, 1), fixed_map),             # b3
    ]
    out_specs = pl.BlockSpec((tb, 1), batch_map)

    return pl.pallas_call(
        mine_critic_kernel,
        out_shape=jax.ShapeDtypeStruct((batch, 1), jnp.float32),
        grid=grid,
        in_specs=in_specs,
        out_specs=out_specs,
        compiler_params=pltpu.CompilerParams(
            dimension_semantics=("parallel",),       # v7x: shard batch tiles over 2 TCs
            vmem_limit_bytes=_VMEM_LIMIT_BYTES),
    )(x, y, prepared["w1x"], prepared["w1y"], prepared["b1"], prepared["w2"],
      prepared["b2"], prepared["w3"], prepared["b3"])


def init_params(key, input_dim):
    """Deterministic init mimicking nn.Linear default (uniform +-1/sqrt(fan_in)).
    Weights stored as (in_features, out_features)."""
    dims = [(2 * input_dim, 128), (128, 128), (128, 1)]
    params = []
    for (fan_in, fan_out) in dims:
        key, kw, kb = jax.random.split(key, 3)
        bound = 1.0 / jnp.sqrt(fan_in)
        w = jax.random.uniform(kw, (fan_in, fan_out), jnp.float32, -bound, bound)
        b = jax.random.uniform(kb, (1, fan_out), jnp.float32, -bound, bound)
        params += [w, b]
    return tuple(params)


def reference_forward(x, y, params):
    """Pure-JAX f32 reference with the original module semantics."""
    w1, b1, w2, b2, w3, b3 = params
    h = jnp.concatenate([x, y], axis=-1)
    h = jnp.maximum(h @ w1 + b1, 0.0)
    h = jnp.maximum(h @ w2 + b2, 0.0)
    return h @ w3 + b3


if __name__ == "__main__":
    key = jax.random.PRNGKey(0)
    kx, ky, kp = jax.random.split(key, 3)

    batch, input_dim = 8, 32
    x = jax.random.normal(kx, (batch, input_dim), jnp.float32)
    y = jax.random.normal(ky, (batch, input_dim), jnp.float32)
    params = init_params(kp, input_dim)
    ref = reference_forward(x, y, params)

    # Exact structural check: f32 compute path matches the pure-JAX reference tightly.
    prep_f32 = prepare_params(params, compute_dtype=jnp.float32)
    out_f32 = jax.block_until_ready(mine_critic_forward(x, y, prep_f32))
    assert out_f32.shape == (batch, 1)
    assert jnp.allclose(out_f32, ref, atol=1e-4, rtol=1e-4), "f32 mismatch vs reference"

    # Default fast path: bf16 matmul operands (cast in-kernel), f32 accumulation.
    prep_bf16 = prepare_params(params)
    out_bf16 = jax.block_until_ready(mine_critic_forward(x, y, prep_bf16))
    assert out_bf16.shape == (batch, 1)
    assert jnp.allclose(out_bf16, ref, atol=5e-2, rtol=5e-2), "bf16 mismatch vs reference"

    # Multi-tile / ragged-batch smoke test (grid > 1 and a partial last tile).
    kb1, kb2 = jax.random.split(jax.random.PRNGKey(1))
    big_b = 1030
    xb = jax.random.normal(kb1, (big_b, input_dim), jnp.float32)
    yb = jax.random.normal(kb2, (big_b, input_dim), jnp.float32)
    out_big = jax.block_until_ready(mine_critic_forward(xb, yb, prep_f32))
    ref_big = reference_forward(xb, yb, params)
    assert out_big.shape == (big_b, 1)
    assert jnp.allclose(out_big, ref_big, atol=1e-3, rtol=1e-3), "multi-tile mismatch"

    print("KERNEL_OK")
</pallas_src>

<mosaic_0001>
module attributes {stable_mosaic.version = 11 : i64} {
  func.func @mine_critic_kernel(%arg0: i32, %arg1: memref<8x32xf32, #tpu.memory_space<vmem>>, %arg2: memref<8x32xf32, #tpu.memory_space<vmem>>, %arg3: memref<32x128xf32, #tpu.memory_space<vmem>>, %arg4: memref<32x128xf32, #tpu.memory_space<vmem>>, %arg5: memref<1x128xf32, #tpu.memory_space<vmem>>, %arg6: memref<128x128xf32, #tpu.memory_space<vmem>>, %arg7: memref<1x128xf32, #tpu.memory_space<vmem>>, %arg8: memref<1x128xf32, #tpu.memory_space<vmem>>, %arg9: memref<1x1xf32, #tpu.memory_space<vmem>>, %arg10: memref<8x1xf32, #tpu.memory_space<vmem>>) attributes {dimension_semantics = [#tpu.dimension_semantics<parallel>], iteration_bounds = array<i64: 1>, scalar_prefetch = 0 : i64, scratch_operands = 0 : i64, tpu.core_type = #tpu.core_type<tc>, window_params = [{transform_indices = @transform_0, window_bounds = array<i64: 8, 32>}, {transform_indices = @transform_1, window_bounds = array<i64: 8, 32>}, {pipeline_mode = #tpu.pipeline_mode<synchronous>, transform_indices = @transform_2, window_bounds = array<i64: 32, 128>}, {pipeline_mode = #tpu.pipeline_mode<synchronous>, transform_indices = @transform_3, window_bounds = array<i64: 32, 128>}, {pipeline_mode = #tpu.pipeline_mode<synchronous>, transform_indices = @transform_4, window_bounds = array<i64: 1, 128>}, {pipeline_mode = #tpu.pipeline_mode<synchronous>, transform_indices = @transform_5, window_bounds = array<i64: 128, 128>}, {pipeline_mode = #tpu.pipeline_mode<synchronous>, transform_indices = @transform_6, window_bounds = array<i64: 1, 128>}, {pipeline_mode = #tpu.pipeline_mode<synchronous>, transform_indices = @transform_7, window_bounds = array<i64: 1, 128>}, {pipeline_mode = #tpu.pipeline_mode<synchronous>, transform_indices = @transform_8, window_bounds = array<i64: 1, 1>}, {transform_indices = @transform_9, window_bounds = array<i64: 8, 1>}]} {
    %c0 = arith.constant 0 : index
    %c0_0 = arith.constant 0 : index
    %0 = vector.load %arg1[%c0, %c0_0] : memref<8x32xf32, #tpu.memory_space<vmem>>, vector<8x32xf32>
    %c0_1 = arith.constant 0 : index
    %c0_2 = arith.constant 0 : index
    %1 = vector.load %arg2[%c0_1, %c0_2] : memref<8x32xf32, #tpu.memory_space<vmem>>, vector<8x32xf32>
    %c0_3 = arith.constant 0 : index
    %c0_4 = arith.constant 0 : index
    %2 = vector.load %arg3[%c0_3, %c0_4] : memref<32x128xf32, #tpu.memory_space<vmem>>, vector<32x128xf32>
    %cst = arith.constant dense<0.000000e+00> : vector<8x128xf32>
    %3 = tpu.matmul %0, %2, %cst {dimension_numbers = #tpu.dot_dimension_numbers<[1], [0], [0], [1], [0, 0, 1, 1], [], []>} : vector<8x32xf32>, vector<32x128xf32>, vector<8x128xf32> -> vector<8x128xf32>
    %c0_5 = arith.constant 0 : index
    %c0_6 = arith.constant 0 : index
    %4 = vector.load %arg4[%c0_5, %c0_6] : memref<32x128xf32, #tpu.memory_space<vmem>>, vector<32x128xf32>
    %cst_7 = arith.constant dense<0.000000e+00> : vector<8x128xf32>
    %5 = tpu.matmul %1, %4, %cst_7 {dimension_numbers = #tpu.dot_dimension_numbers<[1], [0], [0], [1], [0, 0, 1, 1], [], []>} : vector<8x32xf32>, vector<32x128xf32>, vector<8x128xf32> -> vector<8x128xf32>
    %6 = arith.addf %3, %5 : vector<8x128xf32>
    %c0_8 = arith.constant 0 : index
    %c0_9 = arith.constant 0 : index
    %7 = vector.load %arg5[%c0_8, %c0_9] : memref<1x128xf32, #tpu.memory_space<vmem>>, vector<1x128xf32>
    %8 = vector.broadcast %7 : vector<1x128xf32> to vector<8x128xf32>
    %9 = arith.addf %6, %8 : vector<8x128xf32>
    %cst_10 = arith.constant 0.000000e+00 : f32
    %10 = vector.broadcast %cst_10 : f32 to vector<8x128xf32>
    %11 = arith.maximumf %9, %10 : vector<8x128xf32>
    %c0_11 = arith.constant 0 : index
    %c0_12 = arith.constant 0 : index
    %12 = vector.load %arg6[%c0_11, %c0_12] : memref<128x128xf32, #tpu.memory_space<vmem>>, vector<128x128xf32>
    %cst_13 = arith.constant dense<0.000000e+00> : vector<8x128xf32>
    %13 = tpu.matmul %11, %12, %cst_13 {dimension_numbers = #tpu.dot_dimension_numbers<[1], [0], [0], [1], [0, 0, 1, 1], [], []>} : vector<8x128xf32>, vector<128x128xf32>, vector<8x128xf32> -> vector<8x128xf32>
    %c0_14 = arith.constant 0 : index
    %c0_15 = arith.constant 0 : index
    %14 = vector.load %arg7[%c0_14, %c0_15] : memref<1x128xf32, #tpu.memory_space<vmem>>, vector<1x128xf32>
    %15 = vector.broadcast %14 : vector<1x128xf32> to vector<8x128xf32>
    %16 = arith.addf %13, %15 : vector<8x128xf32>
    %cst_16 = arith.constant 0.000000e+00 : f32
    %17 = vector.broadcast %cst_16 : f32 to vector<8x128xf32>
    %18 = arith.maximumf %16, %17 : vector<8x128xf32>
    %c0_17 = arith.constant 0 : index
    %c0_18 = arith.constant 0 : index
    %19 = vector.load %arg8[%c0_17, %c0_18] : memref<1x128xf32, #tpu.memory_space<vmem>>, vector<1x128xf32>
    %20 = vector.broadcast %19 : vector<1x128xf32> to vector<8x128xf32>
    %21 = arith.mulf %18, %20 : vector<8x128xf32>
    %cst_19 = arith.constant dense<0.000000e+00> : vector<8xf32>
    %22 = vector.multi_reduction <add>, %21, %cst_19 [1] : vector<8x128xf32> to vector<8xf32>
    %23 = vector.shape_cast %22 : vector<8xf32> to vector<8x1xf32>
    %c0_20 = arith.constant 0 : index
    %c0_21 = arith.constant 0 : index
    %24 = vector.load %arg9[%c0_20, %c0_21] : memref<1x1xf32, #tpu.memory_space<vmem>>, vector<1x1xf32>
    %25 = vector.broadcast %24 : vector<1x1xf32> to vector<8x1xf32>
    %26 = arith.addf %23, %25 : vector<8x1xf32>
    %c0_22 = arith.constant 0 : index
    %c0_23 = arith.constant 0 : index
    %27 = vector.load %arg10[%c0_22, %c0_23] : memref<8x1xf32, #tpu.memory_space<vmem>>, vector<8x1xf32>
    tpu.vector_store %arg10[%c0_22, %c0_23], %26 {strides = array<i32>} : memref<8x1xf32, #tpu.memory_space<vmem>>, vector<8x1xf32>,
    return
  }
  func.func @transform_0(%arg0: i32) -> (i32, i32) {
    %c0_i32 = arith.constant 0 : i32
    %c0_i32_0 = arith.constant 0 : i32
    return %arg0, %c0_i32 : i32, i32
  }
  func.func @transform_1(%arg0: i32) -> (i32, i32) {
    %c0_i32 = arith.constant 0 : i32
    %c0_i32_0 = arith.constant 0 : i32
    return %arg0, %c0_i32 : i32, i32
  }
  func.func @transform_2(%arg0: i32) -> (i32, i32) {
    %c0_i32 = arith.constant 0 : i32
    %c0_i32_0 = arith.constant 0 : i32
    %c0_i32_1 = arith.constant 0 : i32
    return %c0_i32, %c0_i32_0 : i32, i32
  }
  func.func @transform_3(%arg0: i32) -> (i32, i32) {
    %c0_i32 = arith.constant 0 : i32
    %c0_i32_0 = arith.constant 0 : i32
    %c0_i32_1 = arith.constant 0 : i32
    return %c0_i32, %c0_i32_0 : i32, i32
  }
  func.func @transform_4(%arg0: i32) -> (i32, i32) {
    %c0_i32 = arith.constant 0 : i32
    %c0_i32_0 = arith.constant 0 : i32
    %c0_i32_1 = arith.constant 0 : i32
    return %c0_i32, %c0_i32_0 : i32, i32
  }
  func.func @transform_5(%arg0: i32) -> (i32, i32) {
    %c0_i32 = arith.constant 0 : i32
    %c0_i32_0 = arith.constant 0 : i32
    %c0_i32_1 = arith.constant 0 : i32
    return %c0_i32, %c0_i32_0 : i32, i32
  }
  func.func @transform_6(%arg0: i32) -> (i32, i32) {
    %c0_i32 = arith.constant 0 : i32
    %c0_i32_0 = arith.constant 0 : i32
    %c0_i32_1 = arith.constant 0 : i32
    return %c0_i32, %c0_i32_0 : i32, i32
  }
  func.func @transform_7(%arg0: i32) -> (i32, i32) {
    %c0_i32 = arith.constant 0 : i32
    %c0_i32_0 = arith.constant 0 : i32
    %c0_i32_1 = arith.constant 0 : i32
    return %c0_i32, %c0_i32_0 : i32, i32
  }
  func.func @transform_8(%arg0: i32) -> (i32, i32) {
    %c0_i32 = arith.constant 0 : i32
    %c0_i32_0 = arith.constant 0 : i32
    %c0_i32_1 = arith.constant 0 : i32
    return %c0_i32, %c0_i32_0 : i32, i32
  }
  func.func @transform_9(%arg0: i32) -> (i32, i32) {
    %c0_i32 = arith.constant 0 : i32
    %c0_i32_0 = arith.constant 0 : i32
    return %arg0, %c0_i32 : i32, i32
  }
}

</mosaic_0001>

<bundles_post_ra>
// kernel: tpu_custom_call.1
= control target key start
LH: loop header
LB: loop body
LE: loop exit
PB: predicated region body
PF: predicated region fallthrough
CT: control target
= control target key end

     0   :  { %s798_s0 = inlined_call_operand.hbm [shape: f32[8,32], index: 0, kind: input, shape index: {}]   ;;  %s799_s1 = inlined_call_operand.hbm [shape: f32[8,32], index: 1, kind: input, shape index: {}]   ;;  %s800_s2 = inlined_call_operand.hbm [shape: f32[32,128], index: 2, kind: input, shape index: {}]   ;;  %s801_s3 = inlined_call_operand.hbm [shape: f32[32,128], index: 3, kind: input, shape index: {}]   ;;  %s802_s4 = inlined_call_operand.vmem [shape: f32[1,128], index: 4, kind: input, shape index: {}]   ;;  %s803_s5 = inlined_call_operand.hbm [shape: f32[128,128], index: 5, kind: input, shape index: {}]   ;;  %s804_s6 = inlined_call_operand.vmem [shape: f32[1,128], index: 6, kind: input, shape index: {}]   ;;  %s805_s7 = inlined_call_operand.vmem [shape: f32[1,128], index: 7, kind: input, shape index: {}]   ;;  %s806_s8 = inlined_call_operand.<no memory space> [shape: f32[1,1], index: 8, kind: input, shape index: {}]   ;;  %s807_s9 = inlined_call_operand.vmem [shape: f32[8,1], index: 9, kind: output, shape index: {}]  }
   0x1   :  { %v14_v0 = vstv %s806_s8 }
   0x2   :  { %15 = vst [vmem:[#allocation2] sm:$0x1] %v14_v0 }
   0x3   :  { %16 = vsyncpa [#allocation4], 0 }
   0x4   :  { %17 = vsyncpa [#allocation6], 0 }
   0x5   :  { %18 = vsyncpa [#allocation9], 0  ;;  %s637_s11 = smov [#allocation5]   ;;  %s521_s15 = scalar_lea.hbm %s799_s1, 128 }
   0x6   :  { %s35_s12 = sshll.u32 %s637_s11, 4  ;;  %p522_p0 = scmp.ne.s32.totalorder %s799_s1, %s521_s15  ;;  %s36_s12 = int_to_ptr.vmem [resolvable:$true] %s35_s12 }
   0x7   :  { %p525_p1 = scmp.lt.u32.totalorder %s521_s15, %s799_s1 }
   0x9   :  { %p527_p2 = pnand %p525_p1, %p522_p0 }
   0xb   :  { %530 = shalt.err (!%p527_p2)
}
   0xc   :  { %s531_s8 = scalar_lea.vmem %s36_s12, 128  ;;  %p536_p4 = scmp.lt.s32.totalorder %s36_s12, %s36_s12 }
   0xd   :  { %p532_p3 = scmp.ne.s32.totalorder %s36_s12, %s531_s8  ;;  %p537_p5 = scmp.lt.s32.totalorder %s531_s8, %s531_s8 }
   0xf   :  { %p538_p6 = por %p537_p5, %p536_p4 }
  0x11   :  { %p539_p7 = pnand %p538_p6, %p532_p3 }
  0x13   :  { %542 = shalt.err (!%p539_p7)
}
  0x14   :  { %38 = dma.hbm_to_vmem [thread:$0]  %s799_s1, 128, %s36_s12, [#allocation6]  }
  0x15   :  { %s638_s22 = smov [#allocation8]   ;;  %s639_s24 = smov [#allocation3]  }
  0x16   :  { %s56_s23 = sshll.u32 %s638_s22, 4  ;;  %s25_s25 = sshll.u32 %s639_s24, 4  ;;  %s57_s23 = int_to_ptr.vmem [resolvable:$true] %s56_s23  ;;  %s26_s25 = int_to_ptr.vmem [resolvable:$true] %s25_s25 }
  0x17   :  { %s543_s28 = scalar_lea.hbm %s801_s3, 512 }
  0x18   :  { %p544_p8 = scmp.ne.s32.totalorder %s801_s3, %s543_s28  ;;  %p547_p9 = scmp.lt.u32.totalorder %s543_s28, %s801_s3 }
  0x1a   :  { %p549_p10 = pnand %p547_p9, %p544_p8 }
  0x1c   :  { %552 = shalt.err (!%p549_p10)
}
  0x1d   :  { %s553_s1 = scalar_lea.vmem %s57_s23, 512  ;;  %p558_p12 = scmp.lt.s32.totalorder %s57_s23, %s57_s23 }
  0x1e   :  { %p554_p11 = scmp.ne.s32.totalorder %s57_s23, %s553_s1  ;;  %p559_p13 = scmp.lt.s32.totalorder %s553_s1, %s553_s1 }
  0x20   :  { %p560_p0 = por %p559_p13, %p558_p12 }
  0x22   :  { %p561_p1 = pnand %p560_p0, %p554_p11 }
  0x24   :  { %564 = shalt.err (!%p561_p1)
}
  0x25   :  { %s640_s12 = smov 128   ;;  %s641_s13 = smov 8  }
  0x26   :  { %62 = dma.hbm_to_vmem [thread:$0]  %s801_s3, 512, %s57_s23, [#allocation9], %s640_s12, %s640_s12, %s641_s13  }
  0x27   :  { %s565_s18 = scalar_lea.hbm %s798_s0, 128 }
  0x28   :  { %p566_p2 = scmp.ne.s32.totalorder %s798_s0, %s565_s18  ;;  %p569_p3 = scmp.lt.u32.totalorder %s565_s18, %s798_s0 }
  0x2a   :  { %p571_p4 = pnand %p569_p3, %p566_p2 }
  0x2c   :  { %574 = shalt.err (!%p571_p4)
}
  0x2d   :  { %s575_s22 = scalar_lea.vmem %s26_s25, 128  ;;  %p580_p6 = scmp.lt.s32.totalorder %s26_s25, %s26_s25 }
  0x2e   :  { %p576_p5 = scmp.ne.s32.totalorder %s26_s25, %s575_s22  ;;  %p581_p7 = scmp.lt.s32.totalorder %s575_s22, %s575_s22 }
  0x30   :  { %p582_p8 = por %p581_p7, %p580_p6 }
  0x32   :  { %p583_p9 = pnand %p582_p8, %p576_p5 }
  0x34   :  { %586 = shalt.err (!%p583_p9)
}
  0x35   :  { %28 = dma.hbm_to_vmem [thread:$0]  %s798_s0, 128, %s26_s25, [#allocation4]  }
  0x36   :  { %s642_s24 = smov [#allocation7]   ;;  %s643_s27 = smov [#allocation10]  }
  0x37   :  { %s44_s26 = sshll.u32 %s642_s24, 4  ;;  %s70_s28 = sshll.u32 %s643_s27, 4  ;;  %s45_s26 = int_to_ptr.vmem [resolvable:$true] %s44_s26  ;;  %s71_s28 = int_to_ptr.vmem [resolvable:$true] %s70_s28 }
  0x38   :  { %s587_s10 = scalar_lea.hbm %s800_s2, 512 }
  0x39   :  { %p588_p10 = scmp.ne.s32.totalorder %s800_s2, %s587_s10  ;;  %p591_p11 = scmp.lt.u32.totalorder %s587_s10, %s800_s2 }
  0x3b   :  { %p593_p12 = pnand %p591_p11, %p588_p10 }
  0x3d   :  { %596 = shalt.err (!%p593_p12)
}
  0x3e   :  { %s597_s0 = scalar_lea.vmem %s45_s26, 512  ;;  %p602_p0 = scmp.lt.s32.totalorder %s45_s26, %s45_s26 }
  0x3f   :  { %p598_p13 = scmp.ne.s32.totalorder %s45_s26, %s597_s0  ;;  %p603_p1 = scmp.lt.s32.totalorder %s597_s0, %s597_s0 }
  0x41   :  { %p604_p2 = por %p603_p1, %p602_p0 }
  0x43   :  { %p605_p3 = pnand %p604_p2, %p598_p13 }
  0x45   :  { %608 = shalt.err (!%p605_p3)
}
  0x46   :  { %50 = dma.hbm_to_vmem [thread:$0]  %s800_s2, 512, %s45_s26, [#allocation6], %s640_s12, %s640_s12, %s641_s13  }
  0x47   :  { %s609_s19 = scalar_lea.hbm %s803_s5, 2048 }
  0x48   :  { %p610_p4 = scmp.ne.s32.totalorder %s803_s5, %s609_s19  ;;  %p613_p5 = scmp.lt.u32.totalorder %s609_s19, %s803_s5 }
  0x4a   :  { %p615_p6 = pnand %p613_p5, %p610_p4 }
  0x4c   :  { %618 = shalt.err (!%p615_p6)
}
  0x4d   :  { %s619_s3 = scalar_lea.vmem %s71_s28, 2048  ;;  %p624_p8 = scmp.lt.s32.totalorder %s71_s28, %s71_s28 }
  0x4e   :  { %p620_p7 = scmp.ne.s32.totalorder %s71_s28, %s619_s3  ;;  %p625_p9 = scmp.lt.s32.totalorder %s619_s3, %s619_s3 }
  0x50   :  { %p626_p10 = por %p625_p9, %p624_p8 }
  0x52   :  { %p627_p11 = pnand %p626_p10, %p620_p7 }
  0x54   :  { %630 = shalt.err (!%p627_p11)
}
  0x55   :  { %76 = dma.hbm_to_vmem [thread:$0]  %s803_s5, 2048, %s71_s28, [#allocation9], %s640_s12, %s640_s12, %s641_s13  }
  0x56   :  { %631 = dma.done.wait [#allocation4], 128  }
  0x57   :  { %632 = vsyncadd [#allocation4], 4294967168 }
  0x58   :  { %633 = dma.done.wait [#allocation6], 640  }
  0x59   :  { %634 = vsyncadd [#allocation6], 4294966656 }
  0x5a   :  { %635 = dma.done.wait [#allocation9], 2560  }
  0x5b   :  { %636 = vsyncadd [#allocation9], 4294964736  ;;  %v644_v1 = vmov 0.0|0.0   ;;  %vm645_vm0 = vmmov 0   ;;  %v646_v2 = vmov 0.0   ;;  %v104_v3 = vld [vmem:[#allocation8] sm:$0xff] }
  0x5c   :  { %475 = vmatprep.subr.bf16.mxu1 %v644_v1  ;;  %426 = vmatprep.mubr.msk.f32.mxu1 %vm645_vm0, %v646_v2  ;;  %v105_v4 = vld [vmem:[#allocation8 + $0x8] sm:$0xff]  ;;  %v106_v5 = vld [vmem:[#allocation8 + $0x10] sm:$0xff]  ;;  %v107_v7 = vld [vmem:[#allocation8 + $0x18] sm:$0xff]  ;;  %vm108_vm1 = vcmask 261120   ;;  %vm376_vm2 = vcmask 7168  }
  0x5d   :  { %487 = vmatprep.subr.bf16.mxu0 %v644_v1  ;;  %472 = vmatprep.mubr.msk.f32.mxu0 %vm645_vm0, %v646_v2  ;;  %v476_v6 = vpack.c.bf16 %v105_v4, %v104_v3  ;;  %v479_v8 = vpack.c.bf16 %v107_v7, %v106_v5  ;;  %v100_v9 = vld [vmem:[#allocation7] sm:$0xff]  ;;  %v265_v11 = vld [vmem:[#allocation10 + $0x8] sm:$0xff]  ;;  %v266_v14 = vld [vmem:[#allocation10 + $0x10] sm:$0xff] }
  0x5e   :  { %v264_v10 = vld [vmem:[#allocation10] sm:$0xff]  ;;  %v101_v12 = vld [vmem:[#allocation7 + $0x8] sm:$0xff]  ;;  %v267_v15 = vld [vmem:[#allocation10 + $0x18] sm:$0xff] }
  0x5f   :  { %477 = vmatpush3.bf16.msra.mxu1 %v476_v6  ;;  %v488_v13 = vpack.c.bf16 %v265_v11, %v264_v10  ;;  %v491_v16 = vpack.c.bf16 %v267_v15, %v266_v14  ;;  %v99_v17 = vld [vmem:[#allocation5] sm:$0xff]  ;;  %v482_v18 = vpack.c.bf16 %v101_v12, %v100_v9  ;;  %v268_v19 = vld [vmem:[#allocation10 + $0x20] sm:$0xff]  ;;  %v269_v20 = vld [vmem:[#allocation10 + $0x28] sm:$0xff] }
  0x60   :  { %478 = vmatprep.subr.bf16.mxu1 %v644_v1  ;;  %v102_v21 = vld [vmem:[#allocation7 + $0x10] sm:$0xff]  ;;  %v103_v22 = vld [vmem:[#allocation7 + $0x18] sm:$0xff]  ;;  %v494_v23 = vpack.c.bf16 %v269_v20, %v268_v19  ;;  %v272_v29 = vld [vmem:[#allocation10 + $0x40] sm:$0xff] }
  0x61   :  { %489 = vmatpush3.bf16.msra.mxu0 %v488_v13  ;;  %v485_v24 = vpack.c.bf16 %v103_v22, %v102_v21  ;;  %v270_v25 = vld [vmem:[#allocation10 + $0x30] sm:$0xff]  ;;  %v271_v26 = vld [vmem:[#allocation10 + $0x38] sm:$0xff]  ;;  %v273_v30 = vld [vmem:[#allocation10 + $0x48] sm:$0xff] }
  0x62   :  { %490 = vmatprep.subr.bf16.mxu0 %v644_v1  ;;  %v497_v27 = vpack.c.bf16 %v271_v26, %v270_v25  ;;  %v98_v28 = vld [vmem:[#allocation3] sm:$0xff]  ;;  %v500_v31 = vpack.c.bf16 %v273_v30, %v272_v29  ;;  %v275_v33 = vld [vmem:[#allocation10 + $0x58] sm:$0xff]  ;;  %v276_v35 = vld [vmem:[#allocation10 + $0x60] sm:$0xff] }
  0x63   :  { %480 = vmatpush3.bf16.msra.mxu1 %v479_v8  ;;  %v274_v32 = vld [vmem:[#allocation10 + $0x50] sm:$0xff]  ;;  %v277_v36 = vld [vmem:[#allocation10 + $0x68] sm:$0xff]  ;;  %v279_v39 = vld [vmem:[#allocation10 + $0x78] sm:$0xff] }
  0x64   :  { %481 = vmatprep.subr.bf16.mxu1 %v644_v1  ;;  %v503_v34 = vpack.c.bf16 %v275_v33, %v274_v32  ;;  %v506_v37 = vpack.c.bf16 %v277_v36, %v276_v35  ;;  %v278_v38 = vld [vmem:[#allocation10 + $0x70] sm:$0xff]  ;;  %v387_v44 = vld [vmem:[%s802_s4] ss:$0 sm:$0xff] }
  0x65   :  { %492 = vmatpush3.bf16.msra.mxu0 %v491_v16  ;;  %v509_v40 = vpack.c.bf16 %v279_v39, %v278_v38  ;;  %v388_v49 = vld [vmem:[%s804_s6] ss:$0 sm:$0xff] }
  0x66   :  { %427 = vmatmul.mubr.msk.f32.vlgmr.msra.gmra.mrb[0].mxu1 %vm108_vm1, %v99_v17  ;;  %493 = vmatprep.subr.bf16.mxu0 %v644_v1  ;;  %v389_v53 = vld [vmem:[%s805_s7] ss:$0 sm:$0xff] }
  0x67   :  { %483 = vmatpush3.bf16.msra.mxu1 %v482_v18  ;;  %437 = vmatprep.mubr.msk.f32.mxu1 %vm645_vm0, %v646_v2  ;;  %v390_v56 = vld [vmem:[#allocation2] ss:$0 sm:$0xff] }
  0x68   :  { %484 = vmatprep.subr.bf16.mxu1 %v644_v1 }
  0x69   :  { %495 = vmatpush3.bf16.msra.mxu0 %v494_v23 }
  0x6a   :  { %496 = vmatprep.subr.bf16.mxu0 %v644_v1 }
  0x6b   :  { %486 = vmatpush3.bf16.msra.mxu1 %v485_v24 }
  0x6d   :  { %498 = vmatpush3.bf16.msra.mxu0 %v497_v27 }
  0x6e   :  { %438 = vmatmul.mubr.msk.f32.vlgmr.msra.gmra.mrb[2].mxu1 %vm108_vm1, %v98_v28  ;;  %499 = vmatprep.subr.bf16.mxu0 %v644_v1 }
  0x71   :  { %501 = vmatpush3.bf16.msra.mxu0 %v500_v31 }
  0x72   :  { %502 = vmatprep.subr.bf16.mxu0 %v644_v1 }
  0x75   :  { %504 = vmatpush3.bf16.msra.mxu0 %v503_v34 }
  0x76   :  { %505 = vmatprep.subr.bf16.mxu0 %v644_v1 }
  0x79   :  { %507 = vmatpush3.bf16.msra.mxu0 %v506_v37 }
  0x7a   :  { %508 = vmatprep.subr.bf16.mxu0 %v644_v1 }
  0x7d   :  { %510 = vmatpush3.bf16.msra.mxu0 %v509_v40 }
 0x139   :  { %v178_v41 = vpop.f32.mrb[0].mxu1 }
 0x13a   :  { %v428_v42 = vpop.f32.mrb[1].mxu1 }
 0x141   :  { %v251_v43 = vpop.f32.mrb[2].mxu1 }
 0x142   :  { %v252_v45 = vadd.f32 %v251_v43, %v178_v41  ;;  %v439_v46 = vpop.f32.mrb[3].mxu1 }
 0x144   :  { %v262_v47 = vadd.f32 %v387_v44, %v252_v45 }
 0x146   :  { %v263_v48 = vmax.f32 %v262_v47, 0.0 }
 0x148   :  { %473 = vmatmul.mubr.f32.vlgmr.msra.gmra.mrb[0].mxu0 %v263_v48 }
 0x21b   :  { %v353_v50 = vpop.f32.mrb[0].mxu0 }
 0x21c   :  { %v354_v51 = vadd.f32 %v388_v49, %v353_v50  ;;  %v474_v52 = vpop.f32.mrb[1].mxu0 }
 0x21e   :  { %v357_v54 = vmax.f32 %v354_v51, 0.0 }
 0x220   :  { %v365_v55 = vmul.f32 %v389_v53, %v357_v54 }
 0x222   :  { %366 = vadd.xlane.f32.xlu0 %v365_v55 }
 0x2af   :  { %v367_v57 = vpop.xlane.xlu0 %366 }
 0x2b0   :  { %v375_v58 = vadd.f32 %v390_v56, %v367_v57 }
 0x2b2   :  { %377 = vst.msk [vmem:[%s807_s9] sm:$0xff] %vm376_vm2, %v375_v58 }
 0x2b3   :  { %382 = vsyncpa [#allocation4], 1 }
 0x2b4   :  { %383 = vsyncpa [#allocation6], 1 }
 0x2b5   :  { %384 = vsyncpa [#allocation9], 1 }

</bundles_post_ra>
